<compile_context>
chip_gen: v6e
topology: v6e:2x2x1
jax: 0.10.0
libtpu: 0.0.40
codegen_flags: <defaults>
</compile_context>

<pallas_src>
import functools

import jax
import jax.numpy as jnp
from jax.experimental import pallas as pl
from jax.experimental.pallas import tpu as pltpu


def _round_up(x, m):
    return ((x + m - 1) // m) * m


def _cdiv(a, b):
    return -(-a // b)


def _vmem_and_tile_budget(itemsize):
    """Pick vmem limit and a per-tile element budget from the chip's VMEM."""
    cap = 64 * 1024 * 1024  # conservative default (v7x per-TC VMEM)
    try:
        info = pltpu.get_tpu_info()
        c = int(getattr(info, "vmem_capacity_bytes", 0) or 0)
        if c > 0:
            cap = c
    except Exception:
        pass
    vmem_limit = max(32 * 1024 * 1024, min(96 * 1024 * 1024, (cap * 3) // 4))
    budget = max(8 * 1024 * 1024, vmem_limit - 8 * 1024 * 1024)
    # Per element: double-buffered native input + ~4 f32-sized in-kernel temps
    # (upcast / diff / weighted / iota+mask chain).
    tile_elems = max(8 * 128, budget // (2 * itemsize + 16))
    return vmem_limit, tile_elems


def _pick_tb(b_rows, tn, tile_elems):
    """Batch tile: multiple of 8, fits VMEM budget, >=2 blocks for megacore."""
    if b_rows < 8:
        return b_rows  # block == full dim (allowed), single block
    tb = max(8, ((tile_elems // max(tn, 1)) // 8) * 8)
    tb = min(tb, 4096)
    # Keep at least two batch blocks so both v7x TensorCores get work.
    tb = min(tb, max(8, _round_up(_cdiv(b_rows, 2), 8)))
    return tb


# ---------------------------------------------------------------------------
# Kernels
# ---------------------------------------------------------------------------
def _wmse_reduce_kernel(yhat_ref, y_ref, wn_ref, o_ref, *, n, tn, col_ragged):
    # yhat_ref: (TB, TN) native dtype; y_ref/wn_ref: (1, TN) f32 (wn = clamp(w)/n)
    # o_ref:    (TB, 1)  f32, resident across the reduction axis j.
    j = pl.program_id(1)

    @pl.when(j == 0)
    def _():
        o_ref[...] = jnp.zeros_like(o_ref)

    diff = yhat_ref[...].astype(jnp.float32) - y_ref[...]
    contrib = diff * diff * wn_ref[...]
    if col_ragged:
        # Last column block is ragged: out-of-bounds lanes hold garbage from the
        # bounded DMA. Mask the *final* product (where-select, so NaN/inf in the
        # garbage lanes cannot leak through a multiply-by-zero).
        col = j * tn + jax.lax.broadcasted_iota(jnp.int32, contrib.shape, 1)
        contrib = jnp.where(col < n, contrib, 0.0)
    o_ref[...] += jnp.sum(contrib, axis=-1, keepdims=True)


def _wmse_packed_kernel(yhat_ref, y_ref, seg_ref, o_ref):
    # yhat_ref: (TB, C=k*n) native dtype; y_ref: (1, C) f32
    # seg_ref : (C, k) f32 with clamp(w)/n folded in; o_ref: (TB, k) f32
    diff = yhat_ref[...].astype(jnp.float32) - y_ref[...]
    o_ref[...] = jnp.dot(diff * diff, seg_ref[...],
                         precision=jax.lax.Precision.HIGHEST,
                         preferred_element_type=jnp.float32)


# ---------------------------------------------------------------------------
# Wrapper (forward)
# ---------------------------------------------------------------------------
def weighted_mse(yhats, Y_flat, weights, *, min_val=0.001):
    """Pallas-backed WeightedMSE.forward. Returns shape (B,) f32 like torch."""
    n = int(Y_flat.shape[0])
    yhat2d = yhats.reshape((-1, n))          # torch .view(-1, N); no copy
    b = int(yhat2d.shape[0])
    itemsize = jnp.dtype(yhat2d.dtype).itemsize

    # Tiny O(N) operands built in the wrapper: clamp + 1/n folded into weights.
    wn = jnp.maximum(weights.reshape(-1).astype(jnp.float32), float(min_val)) \
        * (1.0 / float(n))
    y32 = Y_flat.reshape(-1).astype(jnp.float32)

    vmem_limit, tile_elems = _vmem_and_tile_budget(itemsize)

    LANES = 128
    k = LANES // n if n < LANES else 1

    # ---------------- packed small-N path (free bitcast reshape only) --------
    if k > 1 and b % k == 0:
        b_phys = b // k
        c = k * n
        yhat_p = yhat2d.reshape((b_phys, c))              # contiguous -> no copy
        y_row = jnp.tile(y32, k).reshape((1, c))
        col = jnp.arange(c, dtype=jnp.int32)
        seg = jnp.where((col[:, None] // n) == jnp.arange(k, dtype=jnp.int32)[None, :],
                        jnp.tile(wn, k)[:, None], 0.0).astype(jnp.float32)

        tb = _pick_tb(b_phys, c, tile_elems)
        nb = _cdiv(b_phys, tb)

        out = pl.pallas_call(
            _wmse_packed_kernel,
            out_shape=jax.ShapeDtypeStruct((b_phys, k), jnp.float32),
            grid_spec=pltpu.PrefetchScalarGridSpec(
                num_scalar_prefetch=0,
                grid=(nb,),
                in_specs=[
                    pl.BlockSpec((tb, c), lambda i: (i, 0)),   # packed yhat tile
                    pl.BlockSpec((1, c), lambda i: (0, 0)),    # tiled Y row
                    pl.BlockSpec((c, k), lambda i: (0, 0)),    # seg * clamp(w)/n
                ],
                out_specs=pl.BlockSpec((tb, k), lambda i: (i, 0)),
            ),
            compiler_params=pltpu.CompilerParams(
                dimension_semantics=("parallel",),
                vmem_limit_bytes=vmem_limit,
            ),
            cost_estimate=pl.CostEstimate(
                flops=int(2 * b * n + 2 * b_phys * c * k),
                transcendentals=0,
                bytes_accessed=int(itemsize * b * n + 4 * (c + c * k) + 4 * b),
            ),
        )(yhat_p, y_row, seg)
        # (b_phys, k) row-major flatten restores logical row order exactly.
        return out.reshape(-1)

    # ---------------- general path (n >= 128, or odd small-N batches) --------
    # TODO(synk): for small N with B % (128//N) != 0, lanes are underused; an
    # lcm-based packing of the Y/weights rows would recover full lane width.
    MAX_TN = 2048
    if n > MAX_TN:
        nk = _cdiv(n, MAX_TN)
        tn = _round_up(_cdiv(n, nk), 128)   # balanced, multiple of 128
        nk = _cdiv(n, tn)
    else:
        tn = n                              # equals full dim -> always legal
        nk = 1
    col_ragged = (n % tn) != 0

    tb = _pick_tb(b, tn, tile_elems)
    nb = _cdiv(b, tb)

    y_row = y32.reshape((1, n))
    wn_row = wn.reshape((1, n))

    kernel = functools.partial(_wmse_reduce_kernel, n=n, tn=tn,
                               col_ragged=col_ragged)

    out = pl.pallas_call(
        kernel,
        out_shape=jax.ShapeDtypeStruct((b, 1), jnp.float32),
        grid_spec=pltpu.PrefetchScalarGridSpec(
            num_scalar_prefetch=0,
            grid=(nb, nk),                        # reduction axis last
            in_specs=[
                pl.BlockSpec((tb, tn), lambda i, j: (i, j)),   # yhat tile (ragged OK)
                pl.BlockSpec((1, tn), lambda i, j: (0, j)),    # Y row (f32)
                pl.BlockSpec((1, tn), lambda i, j: (0, j)),    # clamp(w)/n row (f32)
            ],
            out_specs=pl.BlockSpec((tb, 1), lambda i, j: (i, 0)),
        ),
        compiler_params=pltpu.CompilerParams(
            dimension_semantics=("parallel", "arbitrary"),
            vmem_limit_bytes=vmem_limit,
        ),
        cost_estimate=pl.CostEstimate(
            flops=int(4 * b * n),
            transcendentals=0,
            bytes_accessed=int(itemsize * b * n + 8 * n + 4 * b),
        ),
    )(yhat2d, y_row, wn_row)
    return out.reshape(-1)


# ---------------------------------------------------------------------------
# Self-test
# ---------------------------------------------------------------------------
if __name__ == "__main__":
    key = jax.random.PRNGKey(0)
    keys = jax.random.split(key, 12)
    min_val = 0.001

    def ref_fn(X, Yf, w):
        Xf = X.reshape(-1, Yf.shape[0]).astype(jnp.float32)
        return jnp.mean((Xf - Yf.astype(jnp.float32)) ** 2
                        * jnp.maximum(w.astype(jnp.float32), min_val), axis=-1)

    # --- Case 1: module-sized example, small N=32 -> packed path (k=4) ---
    Y = jax.random.normal(keys[0], (2, 16), dtype=jnp.float32)        # -> N = 32
    Y_flat = Y.reshape(-1)
    N = Y_flat.shape[0]
    weights = min_val + jax.random.uniform(keys[1], (N,), dtype=jnp.float32)
    Yhats = jax.random.normal(keys[2], (4, 2, 16), dtype=jnp.float32)  # -> (4, 32)
    out = jax.block_until_ready(weighted_mse(Yhats, Y_flat, weights, min_val=min_val))
    assert out.shape == (4,)
    assert jnp.allclose(out, ref_fn(Yhats, Y_flat, weights), atol=1e-5, rtol=1e-5)

    # --- Case 2: bf16 inputs, N=64, B=6 -> packed path (k=2), f32 accumulation ---
    Yb = jax.random.normal(keys[3], (64,), dtype=jnp.float32).astype(jnp.bfloat16)
    wb = (min_val + jax.random.uniform(keys[4], (64,), dtype=jnp.float32)).astype(jnp.bfloat16)
    Xb = jax.random.normal(keys[5], (6, 64), dtype=jnp.float32).astype(jnp.bfloat16)
    out_b = jax.block_until_ready(weighted_mse(Xb, Yb, wb, min_val=min_val))
    assert jnp.allclose(out_b, ref_fn(Xb, Yb, wb), atol=1e-4, rtol=1e-4)

    # --- Case 3: N=2500 -> column-tiled reduction with ragged/masked tails ---
    N3 = 2500
    Y3 = jax.random.normal(keys[6], (N3,), dtype=jnp.float32)
    w3 = min_val + jax.random.uniform(keys[7], (N3,), dtype=jnp.float32)
    X3 = jax.random.normal(keys[8], (10, N3), dtype=jnp.float32)
    out3 = jax.block_until_ready(weighted_mse(X3, Y3, w3, min_val=min_val))
    assert jnp.allclose(out3, ref_fn(X3, Y3, w3), atol=1e-4, rtol=1e-4)

    # --- Case 4: small N=32 with B=5 (B % k != 0) -> unpacked fallback path ---
    Y4 = jax.random.normal(keys[9], (32,), dtype=jnp.float32)
    w4 = min_val + jax.random.uniform(keys[10], (32,), dtype=jnp.float32)
    X4 = jax.random.normal(keys[11], (5, 32), dtype=jnp.float32)
    out4 = jax.block_until_ready(weighted_mse(X4, Y4, w4, min_val=min_val))
    assert jnp.allclose(out4, ref_fn(X4, Y4, w4), atol=1e-5, rtol=1e-5)

    # TODO(synk): parameter initialization (torch.rand_like for `weights`) and the
    # nn.Parameter/learnable mechanics live in the training driver; the kernel only
    # implements forward().
    print("KERNEL_OK")
</pallas_src>

<mosaic_0001>
module attributes {stable_mosaic.version = 11 : i64} {
  func.func @_wmse_packed_kernel(%arg0: i32, %arg1: memref<1x128xf32, #tpu.memory_space<vmem>>, %arg2: memref<1x128xf32, #tpu.memory_space<vmem>>, %arg3: memref<128x4xf32, #tpu.memory_space<vmem>>, %arg4: memref<1x4xf32, #tpu.memory_space<vmem>>) attributes {dimension_semantics = [#tpu.dimension_semantics<parallel>], iteration_bounds = array<i64: 1>, scalar_prefetch = 0 : i64, scratch_operands = 0 : i64, tpu.core_type = #tpu.core_type<tc>, window_params = [{transform_indices = @transform_0, window_bounds = array<i64: 1, 128>}, {pipeline_mode = #tpu.pipeline_mode<synchronous>, transform_indices = @transform_1, window_bounds = array<i64: 1, 128>}, {pipeline_mode = #tpu.pipeline_mode<synchronous>, transform_indices = @transform_2, window_bounds = array<i64: 128, 4>}, {transform_indices = @transform_3, window_bounds = array<i64: 1, 4>}]} {
    %c0 = arith.constant 0 : index
    %c0_0 = arith.constant 0 : index
    %0 = vector.load %arg1[%c0, %c0_0] : memref<1x128xf32, #tpu.memory_space<vmem>>, vector<1x128xf32>
    %c0_1 = arith.constant 0 : index
    %c0_2 = arith.constant 0 : index
    %1 = vector.load %arg2[%c0_1, %c0_2] : memref<1x128xf32, #tpu.memory_space<vmem>>, vector<1x128xf32>
    %2 = arith.subf %0, %1 : vector<1x128xf32>
    %3 = arith.mulf %2, %2 : vector<1x128xf32>
    %c0_3 = arith.constant 0 : index
    %c0_4 = arith.constant 0 : index
    %4 = vector.load %arg3[%c0_3, %c0_4] : memref<128x4xf32, #tpu.memory_space<vmem>>, vector<128x4xf32>
    %cst = arith.constant dense<0.000000e+00> : vector<1x4xf32>
    %5 = tpu.matmul %3, %4, %cst {dimension_numbers = #tpu.dot_dimension_numbers<[1], [0], [0], [1], [0, 0, 1, 1], [], []>, precision = #tpu.contract_precision<fp32>} : vector<1x128xf32>, vector<128x4xf32>, vector<1x4xf32> -> vector<1x4xf32>
    %c0_5 = arith.constant 0 : index
    %c0_6 = arith.constant 0 : index
    %6 = vector.load %arg4[%c0_5, %c0_6] : memref<1x4xf32, #tpu.memory_space<vmem>>, vector<1x4xf32>
    tpu.vector_store %arg4[%c0_5, %c0_6], %5 {strides = array<i32>} : memref<1x4xf32, #tpu.memory_space<vmem>>, vector<1x4xf32>,
    return
  }
  func.func @transform_0(%arg0: i32) -> (i32, i32) {
    %c0_i32 = arith.constant 0 : i32
    %c0_i32_0 = arith.constant 0 : i32
    return %arg0, %c0_i32 : i32, i32
  }
  func.func @transform_1(%arg0: i32) -> (i32, i32) {
    %c0_i32 = arith.constant 0 : i32
    %c0_i32_0 = arith.constant 0 : i32
    %c0_i32_1 = arith.constant 0 : i32
    return %c0_i32, %c0_i32_0 : i32, i32
  }
  func.func @transform_2(%arg0: i32) -> (i32, i32) {
    %c0_i32 = arith.constant 0 : i32
    %c0_i32_0 = arith.constant 0 : i32
    %c0_i32_1 = arith.constant 0 : i32
    return %c0_i32, %c0_i32_0 : i32, i32
  }
  func.func @transform_3(%arg0: i32) -> (i32, i32) {
    %c0_i32 = arith.constant 0 : i32
    %c0_i32_0 = arith.constant 0 : i32
    return %arg0, %c0_i32 : i32, i32
  }
}

</mosaic_0001>

<bundles_post_ra>
// kernel: tpu_custom_call.1
= control target key start
LH: loop header
LB: loop body
LE: loop exit
PB: predicated region body
PF: predicated region fallthrough
CT: control target
= control target key end

     0   :  { %v1029_v3 = vmov 0.0   ;;  %vm1030_vm0 = vmmov 0   ;;  %s1472_s0 = inlined_call_operand.vmem [shape: f32[1,128], index: 0, kind: input, shape index: {}]   ;;  %s1473_s1 = inlined_call_operand.vmem [shape: f32[1,128], index: 1, kind: input, shape index: {}]   ;;  %s1474_s2 = inlined_call_operand.vmem [shape: f32[128,4], index: 2, kind: input, shape index: {}]   ;;  %s1475_s3 = inlined_call_operand.hbm [shape: f32[1,4], index: 3, kind: output, shape index: {}]  }
   0x1   :  { %v34_v0 = vld [vmem:[%s1474_s2 + $0x78] sm:$0xff]  ;;  %v33_v1 = vld [vmem:[%s1474_s2 + $0x70] sm:$0xff]  ;;  %v32_v2 = vld [vmem:[%s1474_s2 + $0x68] sm:$0xff]  ;;  %794 = vmatprep.subr.mxu0 %v1029_v3  ;;  %829 = vmatprep.subr.mxu1 %v1029_v3 }
   0x2   :  { %v1062_v4 = vand.u32 4294901760, %v34_v0  ;;  %v1064_v5 = vand.u32 4294901760, %v33_v1  ;;  %v1066_v6 = vand.u32 4294901760, %v32_v2  ;;  %v31_v7 = vld [vmem:[%s1474_s2 + $0x60] sm:$0xff]  ;;  %v30_v8 = vld [vmem:[%s1474_s2 + $0x58] sm:$0xff]  ;;  %v29_v9 = vld [vmem:[%s1474_s2 + $0x50] sm:$0xff]  ;;  %826 = vmatprep.mubr.msk.f32.mxu0 %vm1030_vm0, %v1029_v3  ;;  %861 = vmatprep.mubr.msk.f32.mxu1 %vm1030_vm0, %v1029_v3 }
   0x3   :  { %v1078_v10 = vand.u32 4294901760, %v31_v7  ;;  %v1080_v11 = vand.u32 4294901760, %v30_v8  ;;  %v1082_v12 = vand.u32 4294901760, %v29_v9  ;;  %v28_v13 = vld [vmem:[%s1474_s2 + $0x48] sm:$0xff]  ;;  %v27_v14 = vld [vmem:[%s1474_s2 + $0x40] sm:$0xff]  ;;  %v26_v19 = vld [vmem:[%s1474_s2 + $0x38] sm:$0xff] }
   0x4   :  { %795 = vmatpush3.msra.mxu0 %v1062_v4  ;;  %v1096_v15 = vsub.f32 %v34_v0, %v1062_v4  ;;  %v1099_v16 = vsub.f32 %v33_v1, %v1064_v5  ;;  %v1101_v17 = vand.u32 4294901760, %v28_v13  ;;  %v1104_v18 = vsub.f32 %v32_v2, %v1066_v6  ;;  %v25_v26 = vld [vmem:[%s1474_s2 + $0x30] sm:$0xff]  ;;  %v24_v34 = vld [vmem:[%s1474_s2 + $0x28] sm:$0xff] }
   0x5   :  { %796 = vmatprep.subr.mxu0 %v1029_v3  ;;  %v1111_v20 = vsub.f32 %v31_v7, %v1078_v10  ;;  %v1114_v21 = vsub.f32 %v30_v8, %v1080_v11  ;;  %v1120_v25 = vand.u32 4294901760, %v27_v14  ;;  %v1127_v28 = vand.u32 4294901760, %v26_v19 }
   0x6   :  { %797 = vmatpush3.msra.mxu0 %v1064_v5  ;;  %v129_v22 = vand.u32 4294901760, %v1096_v15  ;;  %v136_v23 = vand.u32 4294901760, %v1099_v16  ;;  %v143_v24 = vand.u32 4294901760, %v1104_v18  ;;  %v1131_v30 = vsub.f32 %v29_v9, %v1082_v12 }
   0x7   :  { %798 = vmatprep.subr.mxu0 %v1029_v3  ;;  %v150_v27 = vand.u32 4294901760, %v1111_v20  ;;  %v157_v29 = vand.u32 4294901760, %v1114_v21  ;;  %v1147_v35 = vsub.f32 %v28_v13, %v1101_v17 }
   0x8   :  { %799 = vmatpush3.msra.mxu0 %v1066_v6  ;;  %v130_v31 = vsub.f32 %v1096_v15, %v129_v22  ;;  %v137_v32 = vsub.f32 %v1099_v16, %v136_v23  ;;  %v144_v33 = vsub.f32 %v1104_v18, %v143_v24 }
   0x9   :  { %8 = vsyncpa [#allocation3], 0  ;;  %800 = vmatprep.subr.mxu0 %v1029_v3  ;;  %v1150_v36 = vand.u32 4294901760, %v25_v26  ;;  %v151_v39 = vsub.f32 %v1111_v20, %v150_v27  ;;  %v164_v40 = vand.u32 4294901760, %v1131_v30  ;;  %v23_v41 = vld [vmem:[%s1474_s2 + $0x20] sm:$0xff]  ;;  %v1161_v42 = vand.u32 4294901760, %v24_v34 }
   0xa   :  { %801 = vmatpush3.msra.mxu0 %v1078_v10  ;;  %v131_v37 = vand.u32 4294901760, %v130_v31  ;;  %v138_v38 = vand.u32 4294901760, %v137_v32  ;;  %v1164_v43 = vsub.f32 %v27_v14, %v1120_v25  ;;  %v145_v44 = vand.u32 4294901760, %v144_v33  ;;  %v15_v48 = vld [vmem:[%s1472_s0] sm:$0x1]  ;;  %v22_v51 = vld [vmem:[%s1474_s2 + $0x18] sm:$0xff] }
   0xb   :  { %802 = vmatprep.subr.mxu0 %v1029_v3  ;;  %v158_v45 = vsub.f32 %v1114_v21, %v157_v29  ;;  %v171_v46 = vand.u32 4294901760, %v1147_v35  ;;  %v1172_v47 = vsub.f32 %v26_v19, %v1127_v28  ;;  %v16_v49 = vld [vmem:[%s1473_s1] sm:$0x1]  ;;  %v1182_v50 = vand.u32 4294901760, %v23_v41  ;;  %v21_v55 = vld [vmem:[%s1474_s2 + $0x10] sm:$0xff]  ;;  %v20_v0 = vld [vmem:[%s1474_s2 + $0x8] sm:$0xff] }
   0xc   :  { %803 = vmatpush3.msra.mxu0 %v1080_v11  ;;  %830 = vmatpush3.msra.mxu1 %v131_v37  ;;  %v152_v52 = vand.u32 4294901760, %v151_v39  ;;  %v165_v53 = vsub.f32 %v1131_v30, %v164_v40  ;;  %v178_v54 = vand.u32 4294901760, %v1164_v43  ;;  %v1196_v56 = vsub.f32 %v25_v26, %v1150_v36  ;;  %v19_v9 = vld [vmem:[%s1474_s2] sm:$0xff]  ;;  %s1031_s2 = smov [#allocation2]  }
   0xd   :  { %804 = vmatprep.subr.mxu0 %v1029_v3  ;;  %831 = vmatprep.subr.mxu1 %v1029_v3  ;;  %v185_v57 = vand.u32 4294901760, %v1172_v47  ;;  %v17_v58 = vsub.f32 %v15_v48, %v16_v49  ;;  %v159_v59 = vand.u32 4294901760, %v158_v45  ;;  %v172_v60 = vsub.f32 %v1147_v35, %v171_v46  ;;  %s684_s19 = sshll.u32 %s1031_s2, 4  ;;  %s685_s19 = int_to_ptr.vmem [resolvable:$true] %s684_s19 }
   0xe   :  { %805 = vmatpush3.msra.mxu0 %v1082_v12  ;;  %832 = vmatpush3.msra.mxu1 %v138_v38  ;;  %v1205_v61 = vand.u32 4294901760, %v22_v51  ;;  %v1208_v62 = vsub.f32 %v24_v34, %v1161_v42  ;;  %v1212_v63 = vand.u32 4294901760, %v21_v55  ;;  %v166_v2 = vand.u32 4294901760, %v165_v53  ;;  %s1007_s20 = scalar_lea.vmem %s685_s19, 16  ;;  %s1011_s21 = scalar_lea.vmem %s685_s19, 32 }
   0xf   :  { %806 = vmatprep.subr.mxu0 %v1029_v3  ;;  %833 = vmatprep.subr.mxu1 %v1029_v3  ;;  %v18_v1 = vmul.f32 %v17_v58, %v17_v58  ;;  %v179_v7 = vsub.f32 %v1164_v43, %v178_v54  ;;  %v192_v8 = vand.u32 4294901760, %v1196_v56  ;;  %v1226_v13 = vsub.f32 %v23_v41, %v1182_v50  ;;  %p1008_p0 = scmp.ne.s32.totalorder %s685_s19, %s1007_s20  ;;  %p1012_p1 = scmp.lt.s32.totalorder %s685_s19, %s685_s19 }
  0x10   :  { %807 = vmatpush3.msra.mxu0 %v1101_v17  ;;  %834 = vmatpush3.msra.mxu1 %v145_v44  ;;  %v186_v14 = vsub.f32 %v1172_v47, %v185_v57  ;;  %v173_v26 = vand.u32 4294901760, %v172_v60  ;;  %v1236_v31 = vand.u32 4294901760, %v20_v0  ;;  %v199_v32 = vand.u32 4294901760, %v1208_v62  ;;  %p1013_p2 = scmp.lt.s32.totalorder %s1011_s21, %s1007_s20 }
  0x11   :  { %808 = vmatprep.subr.mxu0 %v1029_v3  ;;  %835 = vmatprep.subr.mxu1 %v1029_v3  ;;  %v1233_v19 = vand.u32 4294901760, %v18_v1  ;;  %v1240_v33 = vsub.f32 %v22_v51, %v1205_v61  ;;  %v1244_v34 = vand.u32 4294901760, %v19_v9  ;;  %v180_v38 = vand.u32 4294901760, %v179_v7 }
  0x12   :  { %809 = vmatpush3.msra.mxu0 %v1120_v25  ;;  %836 = vmatpush3.msra.mxu1 %v152_v52  ;;  %v193_v39 = vsub.f32 %v1196_v56, %v192_v8  ;;  %v206_v41 = vand.u32 4294901760, %v1226_v13  ;;  %v1255_v44 = vsub.f32 %v21_v55, %v1212_v63  ;;  %v187_v45 = vand.u32 4294901760, %v186_v14  ;;  %p1014_p3 = por %p1013_p2, %p1012_p1 }
  0x13   :  { %810 = vmatprep.subr.mxu0 %v1029_v3  ;;  %837 = vmatprep.subr.mxu1 %v1029_v3  ;;  %v1247_v37 = vsub.f32 %v18_v1, %v1233_v19  ;;  %v200_v48 = vsub.f32 %v1208_v62, %v199_v32  ;;  %v213_v51 = vand.u32 4294901760, %v1240_v33  ;;  %v1266_v52 = vsub.f32 %v20_v0, %v1236_v31 }
  0x14   :  { %811 = vmatpush3.msra.mxu0 %v1127_v28  ;;  %838 = vmatpush3.msra.mxu1 %v159_v59  ;;  %v194_v53 = vand.u32 4294901760, %v193_v39  ;;  %v207_v55 = vsub.f32 %v1226_v13, %v206_v41  ;;  %v220_v58 = vand.u32 4294901760, %v1255_v44  ;;  %v1276_v59 = vsub.f32 %v19_v9, %v1244_v34  ;;  %p1015_p4 = pnand %p1014_p3, %p1008_p0 }
  0x15   :  { %812 = vmatprep.subr.mxu0 %v1029_v3  ;;  %839 = vmatprep.subr.mxu1 %v1029_v3  ;;  %v118_v49 = vand.u32 4294901760, %v1247_v37  ;;  %v201_v60 = vand.u32 4294901760, %v200_v48  ;;  %v214_v1 = vsub.f32 %v1240_v33, %v213_v51  ;;  %vm676_vm1 = vcmask 24576  }
  0x16   :  { %813 = vmatpush3.msra.mxu0 %v1150_v36  ;;  %840 = vmatpush3.msra.mxu1 %v166_v2  ;;  %v227_v2 = vand.u32 4294901760, %v1266_v52  ;;  %v208_v7 = vand.u32 4294901760, %v207_v55  ;;  %v221_v9 = vsub.f32 %v1255_v44, %v220_v58  ;;  %v234_v14 = vand.u32 4294901760, %v1276_v59 }
  0x17   :  { %814 = vmatprep.subr.mxu0 %v1029_v3  ;;  %841 = vmatprep.subr.mxu1 %v1029_v3  ;;  %v119_v0 = vsub.f32 %v1247_v37, %v118_v49 }
  0x18   :  { %815 = vmatpush3.msra.mxu0 %v1161_v42  ;;  %842 = vmatpush3.msra.mxu1 %v173_v26  ;;  %v228_v39 = vsub.f32 %v1266_v52, %v227_v2  ;;  %v235_v48 = vsub.f32 %v1276_v59, %v234_v14 }
  0x19   :  { %816 = vmatprep.subr.mxu0 %v1029_v3  ;;  %843 = vmatprep.subr.mxu1 %v1029_v3  ;;  %v120_v26 = vand.u32 4294901760, %v119_v0 }
  0x1a   :  { %817 = vmatpush3.msra.mxu0 %v1182_v50  ;;  %844 = vmatpush3.msra.mxu1 %v180_v38  ;;  %v215_v38 = vand.u32 4294901760, %v214_v1  ;;  %v236_v55 = vand.u32 4294901760, %v235_v48 }
  0x1b   :  { %818 = vmatprep.subr.mxu0 %v1029_v3  ;;  %845 = vmatprep.subr.mxu1 %v1029_v3 }
  0x1c   :  { %819 = vmatpush3.msra.mxu0 %v1205_v61  ;;  %846 = vmatpush3.msra.mxu1 %v187_v45  ;;  %v222_v45 = vand.u32 4294901760, %v221_v9 }
  0x1d   :  { %820 = vmatprep.subr.mxu0 %v1029_v3  ;;  %847 = vmatprep.subr.mxu1 %v1029_v3 }
  0x1e   :  { %821 = vmatpush3.msra.mxu0 %v1212_v63  ;;  %848 = vmatpush3.msra.mxu1 %v194_v53  ;;  %v229_v53 = vand.u32 4294901760, %v228_v39 }
  0x1f   :  { %822 = vmatprep.subr.mxu0 %v1029_v3  ;;  %849 = vmatprep.subr.mxu1 %v1029_v3 }
  0x20   :  { %823 = vmatpush3.msra.mxu0 %v1236_v31  ;;  %850 = vmatpush3.msra.mxu1 %v201_v60 }
  0x21   :  { %824 = vmatprep.subr.mxu0 %v1029_v3  ;;  %851 = vmatprep.subr.mxu1 %v1029_v3 }
  0x22   :  { %825 = vmatpush3.msra.mxu0 %v1244_v34  ;;  %852 = vmatpush3.msra.mxu1 %v208_v7 }
  0x23   :  { %853 = vmatprep.subr.mxu1 %v1029_v3  ;;  %864 = vmatprep.subr.mxu0 %v1029_v3 }
  0x24   :  { %827 = vmatmul.mubr.f32.vlgmr.msra.gmra.mxu0 %v120_v26  ;;  %854 = vmatpush3.msra.mxu1 %v215_v38 }
  0x25   :  { %865 = vmatpush3.msra.mxu0 %v1096_v15  ;;  %855 = vmatprep.subr.mxu1 %v1029_v3 }
  0x26   :  { %866 = vmatprep.subr.mxu0 %v1029_v3  ;;  %856 = vmatpush3.msra.mxu1 %v222_v45 }
  0x27   :  { %867 = vmatpush3.msra.mxu0 %v1099_v16  ;;  %857 = vmatprep.subr.mxu1 %v1029_v3 }
  0x28   :  { %868 = vmatprep.subr.mxu0 %v1029_v3  ;;  %858 = vmatpush3.msra.mxu1 %v229_v53 }
  0x29   :  { %869 = vmatpush3.msra.mxu0 %v1104_v18  ;;  %859 = vmatprep.subr.mxu1 %v1029_v3 }
  0x2a   :  { %870 = vmatprep.subr.mxu0 %v1029_v3  ;;  %860 = vmatpush3.msra.mxu1 %v236_v55 }
  0x2b   :  { %871 = vmatpush3.msra.mxu0 %v1111_v20  ;;  %862 = vmatmul.mubr.f32.vlgmr.msra.gmra.mxu1 %v1233_v19 }
  0x2c   :  { %872 = vmatprep.subr.mxu0 %v1029_v3  ;;  %899 = vmatprep.subr.mxu1 %v1029_v3 }
  0x2d   :  { %873 = vmatpush3.msra.mxu0 %v1114_v21  ;;  %900 = vmatpush3.msra.mxu1 %v1062_v4 }
  0x2e   :  { %874 = vmatprep.subr.mxu0 %v1029_v3  ;;  %901 = vmatprep.subr.mxu1 %v1029_v3 }
  0x2f   :  { %875 = vmatpush3.msra.mxu0 %v1131_v30  ;;  %902 = vmatpush3.msra.mxu1 %v1064_v5 }
  0x30   :  { %876 = vmatprep.subr.mxu0 %v1029_v3  ;;  %903 = vmatprep.subr.mxu1 %v1029_v3 }
  0x31   :  { %877 = vmatpush3.msra.mxu0 %v1147_v35  ;;  %904 = vmatpush3.msra.mxu1 %v1066_v6 }
  0x32   :  { %878 = vmatprep.subr.mxu0 %v1029_v3  ;;  %905 = vmatprep.subr.mxu1 %v1029_v3 }
  0x33   :  { %879 = vmatpush3.msra.mxu0 %v1164_v43  ;;  %906 = vmatpush3.msra.mxu1 %v1078_v10 }
  0x34   :  { %880 = vmatprep.subr.mxu0 %v1029_v3  ;;  %907 = vmatprep.subr.mxu1 %v1029_v3 }
  0x35   :  { %881 = vmatpush3.msra.mxu0 %v1172_v47  ;;  %908 = vmatpush3.msra.mxu1 %v1080_v11 }
  0x36   :  { %882 = vmatprep.subr.mxu0 %v1029_v3  ;;  %909 = vmatprep.subr.mxu1 %v1029_v3 }
  0x37   :  { %883 = vmatpush3.msra.mxu0 %v1196_v56  ;;  %910 = vmatpush3.msra.mxu1 %v1082_v12 }
  0x38   :  { %884 = vmatprep.subr.mxu0 %v1029_v3  ;;  %911 = vmatprep.subr.mxu1 %v1029_v3 }
  0x39   :  { %885 = vmatpush3.msra.mxu0 %v1208_v62  ;;  %912 = vmatpush3.msra.mxu1 %v1101_v17 }
  0x3a   :  { %886 = vmatprep.subr.mxu0 %v1029_v3  ;;  %913 = vmatprep.subr.mxu1 %v1029_v3 }
  0x3b   :  { %887 = vmatpush3.msra.mxu0 %v1226_v13  ;;  %914 = vmatpush3.msra.mxu1 %v1120_v25 }
  0x3c   :  { %888 = vmatprep.subr.mxu0 %v1029_v3  ;;  %915 = vmatprep.subr.mxu1 %v1029_v3 }
  0x3d   :  { %889 = vmatpush3.msra.mxu0 %v1240_v33  ;;  %916 = vmatpush3.msra.mxu1 %v1127_v28 }
  0x3e   :  { %890 = vmatprep.subr.mxu0 %v1029_v3  ;;  %917 = vmatprep.subr.mxu1 %v1029_v3 }
  0x3f   :  { %891 = vmatpush3.msra.mxu0 %v1255_v44  ;;  %918 = vmatpush3.msra.mxu1 %v1150_v36 }
  0x40   :  { %892 = vmatprep.subr.mxu0 %v1029_v3  ;;  %919 = vmatprep.subr.mxu1 %v1029_v3 }
  0x41   :  { %893 = vmatpush3.msra.mxu0 %v1266_v52  ;;  %920 = vmatpush3.msra.mxu1 %v1161_v42 }
  0x42   :  { %894 = vmatprep.subr.mxu0 %v1029_v3  ;;  %921 = vmatprep.subr.mxu1 %v1029_v3 }
  0x43   :  { %895 = vmatpush3.msra.mxu0 %v1276_v59  ;;  %896 = vmatprep.mubr.msk.f32.mxu0 %vm1030_vm0, %v1029_v3 }
  0x44   :  { %922 = vmatpush3.msra.mxu1 %v1182_v50  ;;  %897 = vmatmul.mubr.f32.vlgmr.msra.gmra.mxu0 %v1247_v37 }
  0x45   :  { %923 = vmatprep.subr.mxu1 %v1029_v3  ;;  %934 = vmatprep.subr.mxu0 %v1029_v3 }
  0x46   :  { %924 = vmatpush3.msra.mxu1 %v1205_v61  ;;  %935 = vmatpush3.msra.mxu0 %v129_v22 }
  0x47   :  { %925 = vmatprep.subr.mxu1 %v1029_v3  ;;  %936 = vmatprep.subr.mxu0 %v1029_v3 }
  0x48   :  { %926 = vmatpush3.msra.mxu1 %v1212_v63  ;;  %937 = vmatpush3.msra.mxu0 %v136_v23 }
  0x49   :  { %927 = vmatprep.subr.mxu1 %v1029_v3  ;;  %938 = vmatprep.subr.mxu0 %v1029_v3 }
  0x4a   :  { %928 = vmatpush3.msra.mxu1 %v1236_v31  ;;  %939 = vmatpush3.msra.mxu0 %v143_v24 }
  0x4b   :  { %929 = vmatprep.subr.mxu1 %v1029_v3  ;;  %940 = vmatprep.subr.mxu0 %v1029_v3 }
  0x4c   :  { %930 = vmatpush3.msra.mxu1 %v1244_v34  ;;  %931 = vmatprep.mubr.msk.f32.mxu1 %vm1030_vm0, %v1029_v3 }
  0x4d   :  { %941 = vmatpush3.msra.mxu0 %v150_v27  ;;  %932 = vmatmul.mubr.f32.vlgmr.msra.gmra.mxu1 %v118_v49 }
  0x4e   :  { %942 = vmatprep.subr.mxu0 %v1029_v3  ;;  %969 = vmatprep.subr.mxu1 %v1029_v3 }
  0x4f   :  { %943 = vmatpush3.msra.mxu0 %v157_v29  ;;  %970 = vmatpush3.msra.mxu1 %v1062_v4 }
  0x50   :  { %944 = vmatprep.subr.mxu0 %v1029_v3  ;;  %971 = vmatprep.subr.mxu1 %v1029_v3 }
  0x51   :  { %945 = vmatpush3.msra.mxu0 %v164_v40  ;;  %972 = vmatpush3.msra.mxu1 %v1064_v5 }
  0x52   :  { %946 = vmatprep.subr.mxu0 %v1029_v3  ;;  %973 = vmatprep.subr.mxu1 %v1029_v3 }
  0x53   :  { %947 = vmatpush3.msra.mxu0 %v171_v46  ;;  %974 = vmatpush3.msra.mxu1 %v1066_v6 }
  0x54   :  { %948 = vmatprep.subr.mxu0 %v1029_v3  ;;  %975 = vmatprep.subr.mxu1 %v1029_v3 }
  0x55   :  { %949 = vmatpush3.msra.mxu0 %v178_v54  ;;  %976 = vmatpush3.msra.mxu1 %v1078_v10 }
  0x56   :  { %950 = vmatprep.subr.mxu0 %v1029_v3  ;;  %977 = vmatprep.subr.mxu1 %v1029_v3 }
  0x57   :  { %951 = vmatpush3.msra.mxu0 %v185_v57  ;;  %978 = vmatpush3.msra.mxu1 %v1080_v11 }
  0x58   :  { %952 = vmatprep.subr.mxu0 %v1029_v3  ;;  %979 = vmatprep.subr.mxu1 %v1029_v3 }
  0x59   :  { %953 = vmatpush3.msra.mxu0 %v192_v8  ;;  %980 = vmatpush3.msra.mxu1 %v1082_v12 }
  0x5a   :  { %954 = vmatprep.subr.mxu0 %v1029_v3  ;;  %981 = vmatprep.subr.mxu1 %v1029_v3 }
  0x5b   :  { %955 = vmatpush3.msra.mxu0 %v199_v32  ;;  %982 = vmatpush3.msra.mxu1 %v1101_v17 }
  0x5c   :  { %956 = vmatprep.subr.mxu0 %v1029_v3  ;;  %983 = vmatprep.subr.mxu1 %v1029_v3 }
  0x5d   :  { %957 = vmatpush3.msra.mxu0 %v206_v41  ;;  %984 = vmatpush3.msra.mxu1 %v1120_v25 }
  0x5e   :  { %958 = vmatprep.subr.mxu0 %v1029_v3  ;;  %985 = vmatprep.subr.mxu1 %v1029_v3 }
  0x5f   :  { %959 = vmatpush3.msra.mxu0 %v213_v51  ;;  %986 = vmatpush3.msra.mxu1 %v1127_v28 }
  0x60   :  { %960 = vmatprep.subr.mxu0 %v1029_v3  ;;  %987 = vmatprep.subr.mxu1 %v1029_v3 }
  0x61   :  { %961 = vmatpush3.msra.mxu0 %v220_v58  ;;  %988 = vmatpush3.msra.mxu1 %v1150_v36 }
  0x62   :  { %962 = vmatprep.subr.mxu0 %v1029_v3  ;;  %989 = vmatprep.subr.mxu1 %v1029_v3 }
  0x63   :  { %963 = vmatpush3.msra.mxu0 %v227_v2  ;;  %990 = vmatpush3.msra.mxu1 %v1161_v42 }
  0x64   :  { %964 = vmatprep.subr.mxu0 %v1029_v3  ;;  %991 = vmatprep.subr.mxu1 %v1029_v3 }
  0x65   :  { %965 = vmatpush3.msra.mxu0 %v234_v14  ;;  %966 = vmatprep.mubr.msk.f32.mxu0 %vm1030_vm0, %v1029_v3 }
  0x66   :  { %992 = vmatpush3.msra.mxu1 %v1182_v50  ;;  %967 = vmatmul.mubr.f32.vlgmr.msra.gmra.mxu0 %v1233_v19 }
  0x67   :  { %993 = vmatprep.subr.mxu1 %v1029_v3  ;;  %1001 = vmatprep.mubr.msk.f32.mxu1 %vm1030_vm0, %v1029_v3 }
  0x68   :  { %994 = vmatpush3.msra.mxu1 %v1205_v61 }
  0x69   :  { %995 = vmatprep.subr.mxu1 %v1029_v3 }
  0x6a   :  { %996 = vmatpush3.msra.mxu1 %v1212_v63 }
  0x6b   :  { %997 = vmatprep.subr.mxu1 %v1029_v3 }
  0x6c   :  { %998 = vmatpush3.msra.mxu1 %v1236_v31 }
  0x6d   :  { %999 = vmatprep.subr.mxu1 %v1029_v3 }
  0x6e   :  { %1000 = vmatpush3.msra.mxu1 %v1244_v34 }
  0x6f   :  { %1002 = vmatmul.mubr.f32.vlgmr.msra.gmra.mxu1 %v1233_v19 }
  0xe4   :  { %v122_v4 = vpop.f32.mrf.mxu0 }
  0xe6   :  { %v828_v5 = vpop.f32.mrf.mxu0 }
  0xeb   :  { %v273_v6 = vpop.f32.mrf.mxu1 }
  0xec   :  { %v274_v18 = vadd.f32 %v273_v6, %v122_v4 }
  0xed   :  { %v863_v10 = vpop.f32.mrf.mxu1 }
 0x104   :  { %v377_v11 = vpop.f32.mrf.mxu0 }
 0x105   :  { %v378_v21 = vadd.f32 %v377_v11, %v274_v18 }
 0x106   :  { %v898_v12 = vpop.f32.mrf.mxu0 }
 0x10d   :  { %v466_v15 = vpop.f32.mrf.mxu1 }
 0x10e   :  { %v467_v22 = vadd.f32 %v466_v15, %v378_v21 }
 0x10f   :  { %v933_v16 = vpop.f32.mrf.mxu1 }
 0x126   :  { %v585_v17 = vpop.f32.mrf.mxu0 }
 0x127   :  { %v586_v3 = vadd.f32 %v585_v17, %v467_v22 }
 0x128   :  { %v968_v20 = vpop.f32.mrf.mxu0 }
 0x12f   :  { %v672_v23 = vpop.f32.mrf.mxu1 }
 0x130   :  { %v673_v24 = vadd.f32 %v672_v23, %v586_v3 }
 0x131   :  { %v1003_v25 = vpop.f32.mrf.mxu1 }
 0x132   :  { %677 = vst.msk [vmem:[#allocation2] sm:$0x1] %vm676_vm1, %v673_v24 }
 0x133   :  { %1018 = shalt.err (!%p1015_p4)
}
 0x134   :  { %687 = dma.vmem_to_hbm [thread:$0]  %s685_s19, 16, %s1475_s3, [#allocation3]  }
 0x135   :  { %1027 = dma.done.wait [#allocation3], 16  }
 0x136   :  { %1028 = vsyncadd [#allocation3], 4294967280 }
 0x137   :  { %691 = vsyncpa [#allocation3], 1 }

</bundles_post_ra>
